<compile_context>
chip_gen: v6e
topology: v6e:2x2x1
jax: 0.10.0
libtpu: 0.0.40
codegen_flags: <defaults>
</compile_context>

<pallas_src>
import jax
import jax.numpy as jnp
from jax.experimental import pallas as pl
from jax.experimental.pallas import tpu as pltpu

HIDDEN = 128
BN_EPS = 1e-5


def _critic_kernel(s_ref, a_ref, pk_ref, w2_ref, w3_ref, b4_ref, q_ref):
    """3x (Linear -> BatchNorm1d(train) -> ReLU) -> Linear, fully VMEM-resident.

    pk_ref packed row layout (all f32):
      rows 0..5                       : g1, be1, g2, be2, g3, be3
      rows 6..6+action_dim-1          : w4^T  (one row per Q output column)
      rows 6+action_dim..+in_dim-1    : w1    (rows = [state | action] features)
    """
    batch = s_ref.shape[0]
    state_dim = s_ref.shape[1]
    action_dim = a_ref.shape[1]
    inv_b = 1.0 / batch  # static batch size

    r_w4 = 6
    r_w1 = 6 + action_dim

    def bn_relu(z, gamma_row):
        # Single-pass batch statistics: mean and E[z^2], biased variance.
        mu = jnp.sum(z, axis=0, keepdims=True) * inv_b
        ex2 = jnp.sum(z * z, axis=0, keepdims=True) * inv_b
        var = jnp.maximum(ex2 - mu * mu, 0.0)           # clamp: no rsqrt(neg) NaN
        scale = pk_ref[gamma_row:gamma_row + 1, :] * jax.lax.rsqrt(var + BN_EPS)
        shift = pk_ref[gamma_row + 1:gamma_row + 2, :] - mu * scale
        return jnp.maximum(z * scale + shift, 0.0)

    s = s_ref[...].astype(jnp.float32)
    a = a_ref[...].astype(jnp.float32)

    # ---- Layer 1: concat(state, action) @ W1 as VPU broadcast-MACs. ----
    # K = state_dim + action_dim is tiny (4 for Pendulum); this skips two
    # padded MXU push/pop round trips at the head of the serial chain and
    # needs no wrapper-side concat.  (Pre-BN bias folded away.)
    z1 = s[:, 0:1] * pk_ref[r_w1:r_w1 + 1, :]
    for k in range(1, state_dim):
        z1 = z1 + s[:, k:k + 1] * pk_ref[r_w1 + k:r_w1 + k + 1, :]
    for k in range(action_dim):
        row = r_w1 + state_dim + k
        z1 = z1 + a[:, k:k + 1] * pk_ref[row:row + 1, :]
    h = bn_relu(z1, 0)

    # ---- Layers 2 & 3: bf16-stored weights, f32 math / accumulation. ----
    w2 = w2_ref[...].astype(jnp.float32)   # upcast after load (v5e-safe)
    h = bn_relu(jnp.dot(h, w2, preferred_element_type=jnp.float32), 2)
    w3 = w3_ref[...].astype(jnp.float32)
    h = bn_relu(jnp.dot(h, w3, preferred_element_type=jnp.float32), 4)

    # ---- Q head: per-column lane reduce (XLU) + SMEM bias; direct store. ----
    cols = []
    for j in range(action_dim):
        w4j = pk_ref[r_w4 + j:r_w4 + j + 1, :]               # (1, HIDDEN)
        cols.append(jnp.sum(h * w4j, axis=-1, keepdims=True) + b4_ref[j])
    q = cols[0] if action_dim == 1 else jnp.concatenate(cols, axis=-1)
    q_ref[...] = q.astype(q_ref.dtype)


def _prep_kernel_params(params, state_dim, action_dim):
    """Re-layout PyTorch-style params for the kernel.

    - Pack BN gammas/betas, w4^T and w1 into a single (6+A+in_dim, 128) f32 block.
    - Drop b1/b2/b3 (exactly cancelled by train-mode BatchNorm mean subtraction).
    - Store the two big weights (w2, w3) in bfloat16 to halve DMA bytes.
    - b4 goes to SMEM as a flat (action_dim,) f32 vector.
    """
    del state_dim  # layout inferred from shapes
    pk = jnp.concatenate(
        [params["g1"], params["be1"],
         params["g2"], params["be2"],
         params["g3"], params["be3"],
         params["w4"].T,          # (action_dim, HIDDEN)
         params["w1"]],           # (state_dim + action_dim, HIDDEN)
        axis=0).astype(jnp.float32)
    w2 = params["w2"].astype(jnp.bfloat16)
    w3 = params["w3"].astype(jnp.bfloat16)
    b4 = params["b4"].reshape(-1).astype(jnp.float32)
    return (pk, w2, w3, b4)


@jax.jit
def critic_forward(state, action, kparams):
    """state: (B, state_dim), action: (B, action_dim) -> q: (B, action_dim)."""
    B = state.shape[0]
    state_dim = state.shape[1]
    action_dim = action.shape[1]
    in_dim = state_dim + action_dim
    pk, w2, w3, b4 = kparams

    vmem = pl.BlockSpec(memory_space=pltpu.MemorySpace.VMEM)
    smem = pl.BlockSpec(memory_space=pltpu.MemorySpace.SMEM)

    cost = pl.CostEstimate(
        flops=2 * B * HIDDEN * (in_dim + 2 * HIDDEN + action_dim)
              + 12 * B * HIDDEN * 3,
        transcendentals=3 * HIDDEN,
        bytes_accessed=int(state.size * 4 + action.size * 4 + pk.size * 4
                           + w2.size * 2 + w3.size * 2 + b4.size * 4
                           + B * action_dim * 4),
    )

    return pl.pallas_call(
        _critic_kernel,
        out_shape=jax.ShapeDtypeStruct((B, action_dim), jnp.float32),
        in_specs=[vmem, vmem, vmem, vmem, vmem, smem],
        out_specs=vmem,
        cost_estimate=cost,
        compiler_params=pltpu.CompilerParams(vmem_limit_bytes=32 * 1024 * 1024),
    )(state, action, pk, w2, w3, b4)


def init_params(key, state_dim, action_dim):
    """Deterministic synthetic parameters with PyTorch-like layout.

    Linear weights are stored transposed: (in_features, out_features).
    BatchNorm gamma=1, beta=0 (PyTorch defaults). Biases b1..b3 are kept here
    (and used in the pure-JAX reference) even though the kernel folds them away.
    """
    in_dim = state_dim + action_dim
    ks = jax.random.split(key, 8)

    def lin(kw, kb, fan_in, fan_out):
        bound = 1.0 / jnp.sqrt(fan_in)
        w = jax.random.uniform(kw, (fan_in, fan_out), jnp.float32, -bound, bound)
        b = jax.random.uniform(kb, (1, fan_out), jnp.float32, -bound, bound)
        return w, b

    w1, b1 = lin(ks[0], ks[1], in_dim, HIDDEN)
    w2, b2 = lin(ks[2], ks[3], HIDDEN, HIDDEN)
    w3, b3 = lin(ks[4], ks[5], HIDDEN, HIDDEN)
    w4, b4 = lin(ks[6], ks[7], HIDDEN, action_dim)

    ones = jnp.ones((1, HIDDEN), jnp.float32)
    zeros = jnp.zeros((1, HIDDEN), jnp.float32)
    return {
        "w1": w1, "b1": b1, "g1": ones, "be1": zeros,
        "w2": w2, "b2": b2, "g2": ones, "be2": zeros,
        "w3": w3, "b3": b3, "g3": ones, "be3": zeros,
        "w4": w4, "b4": b4,
    }


def _reference(state, action, params):
    """Pure-JAX reference of the PyTorch forward (with biases and standard BN)."""
    x = jnp.concatenate([state, action], axis=1).astype(jnp.float32)

    def blk(h, w, b, g, be):
        z = h @ w + b
        mu = jnp.mean(z, axis=0, keepdims=True)
        var = jnp.mean((z - mu) ** 2, axis=0, keepdims=True)
        zn = (z - mu) / jnp.sqrt(var + BN_EPS)
        return jnp.maximum(zn * g + be, 0.0)

    h = blk(x, params["w1"], params["b1"], params["g1"], params["be1"])
    h = blk(h, params["w2"], params["b2"], params["g2"], params["be2"])
    h = blk(h, params["w3"], params["b3"], params["g3"], params["be3"])
    return h @ params["w4"] + params["b4"]


if __name__ == "__main__":
    # Pendulum-v1: state_dim=3, action_dim=1. Small batch.
    state_dim, action_dim, batch = 3, 1, 8

    key = jax.random.PRNGKey(0)
    k_state, k_action, k_params = jax.random.split(key, 3)

    state = jax.random.normal(k_state, (batch, state_dim), jnp.float32)
    action = jax.random.normal(k_action, (batch, action_dim), jnp.float32)
    params = init_params(k_params, state_dim, action_dim)
    kparams = _prep_kernel_params(params, state_dim, action_dim)

    q = critic_forward(state, action, kparams)
    q = jax.block_until_ready(q)

    # Reference uses the same bf16-quantized w2/w3 the kernel stores, so the
    # check isolates kernel math (all f32) from the storage-dtype choice.
    ref_params = dict(params)
    ref_params["w2"] = params["w2"].astype(jnp.bfloat16).astype(jnp.float32)
    ref_params["w3"] = params["w3"].astype(jnp.bfloat16).astype(jnp.float32)
    q_ref = _reference(state, action, ref_params)

    assert q.shape == (batch, action_dim)
    assert jnp.allclose(q, q_ref, atol=1e-4, rtol=1e-4), "mismatch vs reference"

    print("KERNEL_OK")
</pallas_src>

<mosaic_0001>
module attributes {stable_mosaic.version = 11 : i64} {
  func.func @_critic_kernel(%arg0: memref<8x3xf32, #tpu.memory_space<vmem>>, %arg1: memref<8x1xf32, #tpu.memory_space<vmem>>, %arg2: memref<11x128xf32, #tpu.memory_space<vmem>>, %arg3: memref<128x128xbf16, #tpu.memory_space<vmem>>, %arg4: memref<128x128xbf16, #tpu.memory_space<vmem>>, %arg5: memref<1xf32, #tpu.memory_space<smem>>, %arg6: memref<8x1xf32, #tpu.memory_space<vmem>>) attributes {dimension_semantics = [], scalar_prefetch = 0 : i64, scratch_operands = 0 : i64, tpu.core_type = #tpu.core_type<tc>} {
    %c0 = arith.constant 0 : index
    %c0_0 = arith.constant 0 : index
    %0 = vector.load %arg0[%c0, %c0_0] : memref<8x3xf32, #tpu.memory_space<vmem>>, vector<8x3xf32>
    %c0_1 = arith.constant 0 : index
    %c0_2 = arith.constant 0 : index
    %1 = vector.load %arg1[%c0_1, %c0_2] : memref<8x1xf32, #tpu.memory_space<vmem>>, vector<8x1xf32>
    %2 = vector.extract_strided_slice %0 {offsets = [0, 0], sizes = [8, 1], strides = [1, 1]} : vector<8x3xf32> to vector<8x1xf32>
    %c7 = arith.constant 7 : index
    %c0_3 = arith.constant 0 : index
    %3 = vector.load %arg2[%c7, %c0_3] : memref<11x128xf32, #tpu.memory_space<vmem>>, vector<1x128xf32>
    %4 = vector.broadcast %2 : vector<8x1xf32> to vector<8x128xf32>
    %5 = vector.broadcast %3 : vector<1x128xf32> to vector<8x128xf32>
    %6 = arith.mulf %4, %5 : vector<8x128xf32>
    %7 = vector.extract_strided_slice %0 {offsets = [0, 1], sizes = [8, 1], strides = [1, 1]} : vector<8x3xf32> to vector<8x1xf32>
    %c8 = arith.constant 8 : index
    %c0_4 = arith.constant 0 : index
    %8 = vector.load %arg2[%c8, %c0_4] : memref<11x128xf32, #tpu.memory_space<vmem>>, vector<1x128xf32>
    %9 = vector.broadcast %7 : vector<8x1xf32> to vector<8x128xf32>
    %10 = vector.broadcast %8 : vector<1x128xf32> to vector<8x128xf32>
    %11 = arith.mulf %9, %10 : vector<8x128xf32>
    %12 = arith.addf %6, %11 : vector<8x128xf32>
    %13 = vector.extract_strided_slice %0 {offsets = [0, 2], sizes = [8, 1], strides = [1, 1]} : vector<8x3xf32> to vector<8x1xf32>
    %c9 = arith.constant 9 : index
    %c0_5 = arith.constant 0 : index
    %14 = vector.load %arg2[%c9, %c0_5] : memref<11x128xf32, #tpu.memory_space<vmem>>, vector<1x128xf32>
    %15 = vector.broadcast %13 : vector<8x1xf32> to vector<8x128xf32>
    %16 = vector.broadcast %14 : vector<1x128xf32> to vector<8x128xf32>
    %17 = arith.mulf %15, %16 : vector<8x128xf32>
    %18 = arith.addf %12, %17 : vector<8x128xf32>
    %c10 = arith.constant 10 : index
    %c0_6 = arith.constant 0 : index
    %19 = vector.load %arg2[%c10, %c0_6] : memref<11x128xf32, #tpu.memory_space<vmem>>, vector<1x128xf32>
    %20 = vector.broadcast %1 : vector<8x1xf32> to vector<8x128xf32>
    %21 = vector.broadcast %19 : vector<1x128xf32> to vector<8x128xf32>
    %22 = arith.mulf %20, %21 : vector<8x128xf32>
    %23 = arith.addf %18, %22 : vector<8x128xf32>
    %cst = arith.constant dense<0.000000e+00> : vector<128xf32>
    %24 = vector.multi_reduction <add>, %23, %cst [0] : vector<8x128xf32> to vector<128xf32>
    %25 = vector.shape_cast %24 : vector<128xf32> to vector<1x128xf32>
    %cst_7 = arith.constant 1.250000e-01 : f32
    %26 = vector.broadcast %cst_7 : f32 to vector<1x128xf32>
    %27 = arith.mulf %25, %26 : vector<1x128xf32>
    %28 = arith.mulf %23, %23 : vector<8x128xf32>
    %cst_8 = arith.constant dense<0.000000e+00> : vector<128xf32>
    %29 = vector.multi_reduction <add>, %28, %cst_8 [0] : vector<8x128xf32> to vector<128xf32>
    %30 = vector.shape_cast %29 : vector<128xf32> to vector<1x128xf32>
    %cst_9 = arith.constant 1.250000e-01 : f32
    %31 = vector.broadcast %cst_9 : f32 to vector<1x128xf32>
    %32 = arith.mulf %30, %31 : vector<1x128xf32>
    %33 = arith.mulf %27, %27 : vector<1x128xf32>
    %34 = arith.subf %32, %33 : vector<1x128xf32>
    %cst_10 = arith.constant 0.000000e+00 : f32
    %35 = vector.broadcast %cst_10 : f32 to vector<1x128xf32>
    %36 = arith.maximumf %34, %35 : vector<1x128xf32>
    %c0_11 = arith.constant 0 : index
    %c0_12 = arith.constant 0 : index
    %37 = vector.load %arg2[%c0_11, %c0_12] : memref<11x128xf32, #tpu.memory_space<vmem>>, vector<1x128xf32>
    %cst_13 = arith.constant 9.99999974E-6 : f32
    %38 = vector.broadcast %cst_13 : f32 to vector<1x128xf32>
    %39 = arith.addf %36, %38 : vector<1x128xf32>
    %40 = math.rsqrt %39 : vector<1x128xf32>
    %41 = arith.mulf %37, %40 : vector<1x128xf32>
    %c1 = arith.constant 1 : index
    %c0_14 = arith.constant 0 : index
    %42 = vector.load %arg2[%c1, %c0_14] : memref<11x128xf32, #tpu.memory_space<vmem>>, vector<1x128xf32>
    %43 = arith.mulf %27, %41 : vector<1x128xf32>
    %44 = arith.subf %42, %43 : vector<1x128xf32>
    %45 = vector.broadcast %41 : vector<1x128xf32> to vector<8x128xf32>
    %46 = arith.mulf %23, %45 : vector<8x128xf32>
    %47 = vector.broadcast %44 : vector<1x128xf32> to vector<8x128xf32>
    %48 = arith.addf %46, %47 : vector<8x128xf32>
    %cst_15 = arith.constant 0.000000e+00 : f32
    %49 = vector.broadcast %cst_15 : f32 to vector<8x128xf32>
    %50 = arith.maximumf %48, %49 : vector<8x128xf32>
    %c0_16 = arith.constant 0 : index
    %c0_17 = arith.constant 0 : index
    %51 = vector.load %arg3[%c0_16, %c0_17] : memref<128x128xbf16, #tpu.memory_space<vmem>>, vector<128x128xbf16>
    %52 = arith.extf %51 : vector<128x128xbf16> to vector<128x128xf32>
    %cst_18 = arith.constant dense<0.000000e+00> : vector<8x128xf32>
    %53 = tpu.matmul %50, %52, %cst_18 {dimension_numbers = #tpu.dot_dimension_numbers<[1], [0], [0], [1], [0, 0, 1, 1], [], []>} : vector<8x128xf32>, vector<128x128xf32>, vector<8x128xf32> -> vector<8x128xf32>
    %cst_19 = arith.constant dense<0.000000e+00> : vector<128xf32>
    %54 = vector.multi_reduction <add>, %53, %cst_19 [0] : vector<8x128xf32> to vector<128xf32>
    %55 = vector.shape_cast %54 : vector<128xf32> to vector<1x128xf32>
    %cst_20 = arith.constant 1.250000e-01 : f32
    %56 = vector.broadcast %cst_20 : f32 to vector<1x128xf32>
    %57 = arith.mulf %55, %56 : vector<1x128xf32>
    %58 = arith.mulf %53, %53 : vector<8x128xf32>
    %cst_21 = arith.constant dense<0.000000e+00> : vector<128xf32>
    %59 = vector.multi_reduction <add>, %58, %cst_21 [0] : vector<8x128xf32> to vector<128xf32>
    %60 = vector.shape_cast %59 : vector<128xf32> to vector<1x128xf32>
    %cst_22 = arith.constant 1.250000e-01 : f32
    %61 = vector.broadcast %cst_22 : f32 to vector<1x128xf32>
    %62 = arith.mulf %60, %61 : vector<1x128xf32>
    %63 = arith.mulf %57, %57 : vector<1x128xf32>
    %64 = arith.subf %62, %63 : vector<1x128xf32>
    %cst_23 = arith.constant 0.000000e+00 : f32
    %65 = vector.broadcast %cst_23 : f32 to vector<1x128xf32>
    %66 = arith.maximumf %64, %65 : vector<1x128xf32>
    %c2 = arith.constant 2 : index
    %c0_24 = arith.constant 0 : index
    %67 = vector.load %arg2[%c2, %c0_24] : memref<11x128xf32, #tpu.memory_space<vmem>>, vector<1x128xf32>
    %cst_25 = arith.constant 9.99999974E-6 : f32
    %68 = vector.broadcast %cst_25 : f32 to vector<1x128xf32>
    %69 = arith.addf %66, %68 : vector<1x128xf32>
    %70 = math.rsqrt %69 : vector<1x128xf32>
    %71 = arith.mulf %67, %70 : vector<1x128xf32>
    %c3 = arith.constant 3 : index
    %c0_26 = arith.constant 0 : index
    %72 = vector.load %arg2[%c3, %c0_26] : memref<11x128xf32, #tpu.memory_space<vmem>>, vector<1x128xf32>
    %73 = arith.mulf %57, %71 : vector<1x128xf32>
    %74 = arith.subf %72, %73 : vector<1x128xf32>
    %75 = vector.broadcast %71 : vector<1x128xf32> to vector<8x128xf32>
    %76 = arith.mulf %53, %75 : vector<8x128xf32>
    %77 = vector.broadcast %74 : vector<1x128xf32> to vector<8x128xf32>
    %78 = arith.addf %76, %77 : vector<8x128xf32>
    %cst_27 = arith.constant 0.000000e+00 : f32
    %79 = vector.broadcast %cst_27 : f32 to vector<8x128xf32>
    %80 = arith.maximumf %78, %79 : vector<8x128xf32>
    %c0_28 = arith.constant 0 : index
    %c0_29 = arith.constant 0 : index
    %81 = vector.load %arg4[%c0_28, %c0_29] : memref<128x128xbf16, #tpu.memory_space<vmem>>, vector<128x128xbf16>
    %82 = arith.extf %81 : vector<128x128xbf16> to vector<128x128xf32>
    %cst_30 = arith.constant dense<0.000000e+00> : vector<8x128xf32>
    %83 = tpu.matmul %80, %82, %cst_30 {dimension_numbers = #tpu.dot_dimension_numbers<[1], [0], [0], [1], [0, 0, 1, 1], [], []>} : vector<8x128xf32>, vector<128x128xf32>, vector<8x128xf32> -> vector<8x128xf32>
    %cst_31 = arith.constant dense<0.000000e+00> : vector<128xf32>
    %84 = vector.multi_reduction <add>, %83, %cst_31 [0] : vector<8x128xf32> to vector<128xf32>
    %85 = vector.shape_cast %84 : vector<128xf32> to vector<1x128xf32>
    %cst_32 = arith.constant 1.250000e-01 : f32
    %86 = vector.broadcast %cst_32 : f32 to vector<1x128xf32>
    %87 = arith.mulf %85, %86 : vector<1x128xf32>
    %88 = arith.mulf %83, %83 : vector<8x128xf32>
    %cst_33 = arith.constant dense<0.000000e+00> : vector<128xf32>
    %89 = vector.multi_reduction <add>, %88, %cst_33 [0] : vector<8x128xf32> to vector<128xf32>
    %90 = vector.shape_cast %89 : vector<128xf32> to vector<1x128xf32>
    %cst_34 = arith.constant 1.250000e-01 : f32
    %91 = vector.broadcast %cst_34 : f32 to vector<1x128xf32>
    %92 = arith.mulf %90, %91 : vector<1x128xf32>
    %93 = arith.mulf %87, %87 : vector<1x128xf32>
    %94 = arith.subf %92, %93 : vector<1x128xf32>
    %cst_35 = arith.constant 0.000000e+00 : f32
    %95 = vector.broadcast %cst_35 : f32 to vector<1x128xf32>
    %96 = arith.maximumf %94, %95 : vector<1x128xf32>
    %c4 = arith.constant 4 : index
    %c0_36 = arith.constant 0 : index
    %97 = vector.load %arg2[%c4, %c0_36] : memref<11x128xf32, #tpu.memory_space<vmem>>, vector<1x128xf32>
    %cst_37 = arith.constant 9.99999974E-6 : f32
    %98 = vector.broadcast %cst_37 : f32 to vector<1x128xf32>
    %99 = arith.addf %96, %98 : vector<1x128xf32>
    %100 = math.rsqrt %99 : vector<1x128xf32>
    %101 = arith.mulf %97, %100 : vector<1x128xf32>
    %c5 = arith.constant 5 : index
    %c0_38 = arith.constant 0 : index
    %102 = vector.load %arg2[%c5, %c0_38] : memref<11x128xf32, #tpu.memory_space<vmem>>, vector<1x128xf32>
    %103 = arith.mulf %87, %101 : vector<1x128xf32>
    %104 = arith.subf %102, %103 : vector<1x128xf32>
    %105 = vector.broadcast %101 : vector<1x128xf32> to vector<8x128xf32>
    %106 = arith.mulf %83, %105 : vector<8x128xf32>
    %107 = vector.broadcast %104 : vector<1x128xf32> to vector<8x128xf32>
    %108 = arith.addf %106, %107 : vector<8x128xf32>
    %cst_39 = arith.constant 0.000000e+00 : f32
    %109 = vector.broadcast %cst_39 : f32 to vector<8x128xf32>
    %110 = arith.maximumf %108, %109 : vector<8x128xf32>
    %c6 = arith.constant 6 : index
    %c0_40 = arith.constant 0 : index
    %111 = vector.load %arg2[%c6, %c0_40] : memref<11x128xf32, #tpu.memory_space<vmem>>, vector<1x128xf32>
    %112 = vector.broadcast %111 : vector<1x128xf32> to vector<8x128xf32>
    %113 = arith.mulf %110, %112 : vector<8x128xf32>
    %cst_41 = arith.constant dense<0.000000e+00> : vector<8xf32>
    %114 = vector.multi_reduction <add>, %113, %cst_41 [1] : vector<8x128xf32> to vector<8xf32>
    %115 = vector.shape_cast %114 : vector<8xf32> to vector<8x1xf32>
    %c0_42 = arith.constant 0 : index
    %116 = memref.load %arg5[%c0_42] : memref<1xf32, #tpu.memory_space<smem>>
    %117 = vector.broadcast %116 : f32 to vector<8x1xf32>
    %118 = arith.addf %115, %117 : vector<8x1xf32>
    %c0_43 = arith.constant 0 : index
    %c0_44 = arith.constant 0 : index
    %119 = vector.load %arg6[%c0_43, %c0_44] : memref<8x1xf32, #tpu.memory_space<vmem>>, vector<8x1xf32>
    tpu.vector_store %arg6[%c0_43, %c0_44], %118 {strides = array<i32>} : memref<8x1xf32, #tpu.memory_space<vmem>>, vector<8x1xf32>,
    return
  }
}

</mosaic_0001>

<bundles_post_ra>
// kernel: critic_forward.1
= control target key start
LH: loop header
LB: loop body
LE: loop exit
PB: predicated region body
PF: predicated region fallthrough
CT: control target
= control target key end

     0   :  { %12 = vsyncpa [#allocation4], 0  ;;  %s818_s0 = inlined_call_operand.vmem [shape: f32[8,3], index: 0, kind: input, shape index: {}]   ;;  %s819_s1 = inlined_call_operand.vmem [shape: f32[8,1], index: 1, kind: input, shape index: {}]   ;;  %s820_s2 = inlined_call_operand.vmem [shape: f32[11,128], index: 2, kind: input, shape index: {}]   ;;  %s821_s3 = inlined_call_operand.hbm [shape: bf16[128,128], index: 3, kind: input, shape index: {}]   ;;  %s822_s4 = inlined_call_operand.hbm [shape: bf16[128,128], index: 4, kind: input, shape index: {}]   ;;  %s823_s5 = inlined_call_operand.<no memory space> [shape: f32[1], index: 5, kind: input, shape index: {}]   ;;  %s824_s6 = inlined_call_operand.vmem [shape: f32[8,1], index: 6, kind: output, shape index: {}]  }
   0x1   :  { %13 = vsyncpa [#allocation6], 0  ;;  %s681_s21 = smov [#allocation3]  }
   0x2   :  { %s25_s22 = sshll.u32 %s681_s21, 4  ;;  %s26_s22 = int_to_ptr.vmem [resolvable:$true] %s25_s22 }
   0x3   :  { %s645_s23 = scalar_lea.vmem %s26_s22, 1024  ;;  %p650_p1 = scmp.lt.s32.totalorder %s26_s22, %s26_s22 }
   0x4   :  { %p646_p0 = scmp.ne.s32.totalorder %s26_s22, %s645_s23  ;;  %p651_p2 = scmp.lt.s32.totalorder %s645_s23, %s645_s23 }
   0x6   :  { %p652_p3 = por %p651_p2, %p650_p1 }
   0x8   :  { %p653_p4 = pnand %p652_p3, %p646_p0 }
   0xa   :  { %656 = shalt.err (!%p653_p4)
}
   0xb   :  { %s682_s24 = smov 64   ;;  %s683_s25 = smov 4  }
   0xc   :  { %31 = dma.hbm_to_vmem [thread:$0]  %s821_s3, 1024, %s26_s22, [#allocation4], %s682_s24, %s682_s24, %s683_s25  }
   0xd   :  { %s684_s28 = smov [#allocation5]  }
   0xe   :  { %s37_s29 = sshll.u32 %s684_s28, 4  ;;  %s38_s29 = int_to_ptr.vmem [resolvable:$true] %s37_s29 }
   0xf   :  { %s665_s30 = scalar_lea.vmem %s38_s29, 1024  ;;  %p670_p6 = scmp.lt.s32.totalorder %s38_s29, %s38_s29 }
  0x10   :  { %p666_p5 = scmp.ne.s32.totalorder %s38_s29, %s665_s30  ;;  %p671_p7 = scmp.lt.s32.totalorder %s665_s30, %s665_s30 }
  0x12   :  { %p672_p8 = por %p671_p7, %p670_p6 }
  0x14   :  { %p673_p9 = pnand %p672_p8, %p666_p5 }
  0x16   :  { %676 = shalt.err (!%p673_p9)
}
  0x17   :  { %43 = dma.hbm_to_vmem [thread:$0]  %s822_s4, 1024, %s38_s29, [#allocation6], %s682_s24, %s682_s24, %s683_s25  }
  0x18   :  { %677 = dma.done.wait [#allocation4], 1024  }
  0x19   :  { %678 = vsyncadd [#allocation4], 4294966272 }
  0x1a   :  { %679 = dma.done.wait [#allocation6], 1024  }
  0x1b   :  { %680 = vsyncadd [#allocation6], 4294966272  ;;  %v685_v0 = vmov 0   ;;  %v686_v1 = vmov 2   ;;  %v52_v2 = vld [vmem:[%s818_s0] sm:$0xff]  ;;  %v687_v4 = vmov 1  }
  0x1c   :  { %626 = vset.pattern.permute.xlu0 %v685_v0  ;;  %628 = vset.pattern.permute.xlu1 %v686_v1  ;;  %v53_v3 = vld [vmem:[%s819_s1] sm:$0xff]  ;;  %v505_v5 = vld [vmem:[#allocation3 + $0x38] sm:$0xff]   ;;  %v504_v6 = vld [vmem:[#allocation3 + $0x30] sm:$0xff]   ;;  %v688_v7 = vmov 0.0   ;;  %vm689_vm0 = vmmov 0   ;;  %vm422_vm1 = vcmask 7168  }
  0x1d   :  { %57 = vperm.xlu0 %626, %v52_v2   ;;  %78 = vperm.xlu1 %628, %v52_v2   ;;  %v465_v8 = vunpack.c.l.bf16 %v505_v5  ;;  %v466_v9 = vunpack.c.h.bf16 %v505_v5  ;;  %v462_v10 = vunpack.c.h.bf16 %v504_v6  ;;  %v503_v11 = vld [vmem:[#allocation3 + $0x28] sm:$0xff]   ;;  %v461_v12 = vunpack.c.l.bf16 %v504_v6  ;;  %v502_v14 = vld [vmem:[#allocation3 + $0x20] sm:$0xff]   ;;  %v501_v17 = vld [vmem:[#allocation3 + $0x18] sm:$0xff]  }
  0x1e   :  { %547 = vmatprep.subr.mxu0 %v688_v7  ;;  %579 = vmatprep.mubr.msk.f32.mxu0 %vm689_vm0, %v688_v7  ;;  %v458_v13 = vunpack.c.h.bf16 %v503_v11  ;;  %v457_v15 = vunpack.c.l.bf16 %v503_v11  ;;  %v454_v16 = vunpack.c.h.bf16 %v502_v14  ;;  %v453_v18 = vunpack.c.l.bf16 %v502_v14  ;;  %v500_v20 = vld [vmem:[#allocation3 + $0x10] sm:$0xff]   ;;  %v499_v23 = vld [vmem:[#allocation3 + $0x8] sm:$0xff]   ;;  %v436_v26 = vld [vmem:[#allocation3] sm:$0xff]  }
  0x1f   :  { %582 = vmatprep.subr.mxu1 %v688_v7  ;;  %614 = vmatprep.mubr.msk.f32.mxu1 %vm689_vm0, %v688_v7  ;;  %v450_v19 = vunpack.c.h.bf16 %v501_v17  ;;  %v449_v21 = vunpack.c.l.bf16 %v501_v17  ;;  %v446_v22 = vunpack.c.h.bf16 %v500_v20  ;;  %v445_v24 = vunpack.c.l.bf16 %v500_v20  ;;  %v430_v32 = vld [vmem:[%s820_s2 + $0x7] ss:$0 sm:$0xff]  ;;  %v431_v33 = vld [vmem:[%s820_s2 + $0x8] ss:$0 sm:$0xff]  ;;  %v432_v34 = vld [vmem:[%s820_s2 + $0x9] ss:$0 sm:$0xff] }
  0x20   :  { %548 = vmatpush3.msra.mxu0 %v466_v9  ;;  %v442_v25 = vunpack.c.h.bf16 %v499_v23  ;;  %v441_v27 = vunpack.c.l.bf16 %v499_v23  ;;  %v438_v28 = vunpack.c.h.bf16 %v436_v26  ;;  %v437_v29 = vunpack.c.l.bf16 %v436_v26  ;;  %v433_v36 = vld [vmem:[%s820_s2 + $0xa] ss:$0 sm:$0xff]  ;;  %v121_v6 = vld [vmem:[%s820_s2 + $0x1] sm:$0x1] }
  0x21   :  { %627 = vset.pattern.permute.xlu0 %v687_v4  ;;  %629 = vset.pattern.permute.xlu1 %v685_v0 }
  0x22   :  { %67 = vperm.xlu0 %627, %v52_v2   ;;  %90 = vperm.xlu1 %629, %v53_v3   ;;  %v117_v2 = vld [vmem:[%s820_s2] sm:$0x1] }
  0x23   :  { %549 = vmatprep.subr.mxu0 %v688_v7 }
  0x24   :  { %550 = vmatpush3.msra.mxu0 %v465_v8 }
  0x25   :  { %551 = vmatprep.subr.mxu0 %v688_v7 }
  0x26   :  { %630 = vset.pattern.permute.xlu0 %v685_v0  ;;  %552 = vmatpush3.msra.mxu0 %v462_v10  ;;  %v124_v0 = vlaneseq }
  0x27   :  { %553 = vmatprep.subr.mxu0 %v688_v7 }
  0x28   :  { %554 = vmatpush3.msra.mxu0 %v461_v12  ;;  %v125_v1 = vshrl.u32 %v124_v0, 7 }
  0x29   :  { %555 = vmatprep.subr.mxu0 %v688_v7 }
  0x2a   :  { %556 = vmatpush3.msra.mxu0 %v458_v13  ;;  %v771_v3 = vsub.s32 0, %v125_v1 }
  0x2b   :  { %557 = vmatprep.subr.mxu0 %v688_v7 }
  0x2c   :  { %558 = vmatpush3.msra.mxu0 %v457_v15  ;;  %v512_v15 = vld [vmem:[#allocation5 + $0x38] sm:$0xff]  }
  0x2d   :  { %559 = vmatprep.subr.mxu0 %v688_v7  ;;  %v497_v17 = vunpack.c.l.bf16 %v512_v15 }
  0x2e   :  { %560 = vmatpush3.msra.mxu0 %v454_v16  ;;  %v498_v16 = vunpack.c.h.bf16 %v512_v15 }
  0x2f   :  { %561 = vmatprep.subr.mxu0 %v688_v7 }
  0x30   :  { %562 = vmatpush3.msra.mxu0 %v453_v18  ;;  %583 = vmatpush3.msra.mxu1 %v498_v16  ;;  %v511_v18 = vld [vmem:[#allocation5 + $0x30] sm:$0xff]  }
  0x31   :  { %563 = vmatprep.subr.mxu0 %v688_v7  ;;  %584 = vmatprep.subr.mxu1 %v688_v7  ;;  %v493_v20 = vunpack.c.l.bf16 %v511_v18 }
  0x32   :  { %564 = vmatpush3.msra.mxu0 %v450_v19  ;;  %585 = vmatpush3.msra.mxu1 %v497_v17  ;;  %v494_v19 = vunpack.c.h.bf16 %v511_v18 }
  0x33   :  { %565 = vmatprep.subr.mxu0 %v688_v7  ;;  %586 = vmatprep.subr.mxu1 %v688_v7 }
  0x34   :  { %566 = vmatpush3.msra.mxu0 %v449_v21  ;;  %587 = vmatpush3.msra.mxu1 %v494_v19  ;;  %v510_v21 = vld [vmem:[#allocation5 + $0x28] sm:$0xff]  }
  0x35   :  { %567 = vmatprep.subr.mxu0 %v688_v7  ;;  %588 = vmatprep.subr.mxu1 %v688_v7  ;;  %v489_v23 = vunpack.c.l.bf16 %v510_v21 }
  0x36   :  { %568 = vmatpush3.msra.mxu0 %v446_v22  ;;  %589 = vmatpush3.msra.mxu1 %v493_v20  ;;  %v490_v22 = vunpack.c.h.bf16 %v510_v21 }
  0x37   :  { %569 = vmatprep.subr.mxu0 %v688_v7  ;;  %590 = vmatprep.subr.mxu1 %v688_v7 }
  0x38   :  { %570 = vmatpush3.msra.mxu0 %v445_v24  ;;  %591 = vmatpush3.msra.mxu1 %v490_v22  ;;  %v509_v24 = vld [vmem:[#allocation5 + $0x20] sm:$0xff]  }
  0x39   :  { %571 = vmatprep.subr.mxu0 %v688_v7  ;;  %592 = vmatprep.subr.mxu1 %v688_v7  ;;  %v485_v26 = vunpack.c.l.bf16 %v509_v24 }
  0x3a   :  { %572 = vmatpush3.msra.mxu0 %v442_v25  ;;  %593 = vmatpush3.msra.mxu1 %v489_v23  ;;  %v486_v25 = vunpack.c.h.bf16 %v509_v24 }
  0x3b   :  { %573 = vmatprep.subr.mxu0 %v688_v7  ;;  %594 = vmatprep.subr.mxu1 %v688_v7 }
  0x3c   :  { %574 = vmatpush3.msra.mxu0 %v441_v27  ;;  %595 = vmatpush3.msra.mxu1 %v486_v25  ;;  %v508_v27 = vld [vmem:[#allocation5 + $0x18] sm:$0xff]  }
  0x3d   :  { %575 = vmatprep.subr.mxu0 %v688_v7  ;;  %596 = vmatprep.subr.mxu1 %v688_v7 }
  0x3e   :  { %576 = vmatpush3.msra.mxu0 %v438_v28  ;;  %597 = vmatpush3.msra.mxu1 %v485_v26  ;;  %v482_v28 = vunpack.c.h.bf16 %v508_v27 }
  0x3f   :  { %577 = vmatprep.subr.mxu0 %v688_v7  ;;  %598 = vmatprep.subr.mxu1 %v688_v7 }
  0x40   :  { %578 = vmatpush3.msra.mxu0 %v437_v29  ;;  %599 = vmatpush3.msra.mxu1 %v482_v28  ;;  %v481_v29 = vunpack.c.l.bf16 %v508_v27 }
  0x41   :  { %600 = vmatprep.subr.mxu1 %v688_v7 }
  0x42   :  { %601 = vmatpush3.msra.mxu1 %v481_v29  ;;  %v393_v29 = vld [vmem:[%s820_s2 + $0x4] sm:$0x1] }
  0x43   :  { %602 = vmatprep.subr.mxu1 %v688_v7 }
  0x98   :  { %v58_v30 = vpop.permute.xlu0 %57  ;;  %v79_v31 = vpop.permute.xlu1 %78 }
  0x99   :  { %v64_v38 = vmul.f32 %v430_v32, %v58_v30  ;;  %v85_v40 = vmul.f32 %v432_v34, %v79_v31  ;;  %v507_v30 = vld [vmem:[#allocation5 + $0x10] sm:$0xff]  }
  0x9a   :  { %v478_v31 = vunpack.c.h.bf16 %v507_v30  ;;  %v477_v32 = vunpack.c.l.bf16 %v507_v30 }
  0x9c   :  { %603 = vmatpush3.msra.mxu1 %v478_v31 }
  0x9d   :  { %v68_v35 = vpop.permute.xlu0 %67  ;;  %v91_v37 = vpop.permute.xlu1 %90  ;;  %604 = vmatprep.subr.mxu1 %v688_v7 }
  0x9e   :  { %v74_v39 = vmul.f32 %v431_v33, %v68_v35  ;;  %v97_v42 = vmul.f32 %v433_v36, %v91_v37  ;;  %v506_v33 = vld [vmem:[#allocation5 + $0x8] sm:$0xff]   ;;  %605 = vmatpush3.msra.mxu1 %v477_v32  ;;  %v468_v36 = vld [vmem:[#allocation5] sm:$0xff]  }
  0x9f   :  { %v474_v34 = vunpack.c.h.bf16 %v506_v33  ;;  %606 = vmatprep.subr.mxu1 %v688_v7  ;;  %v473_v35 = vunpack.c.l.bf16 %v506_v33  ;;  %v470_v37 = vunpack.c.h.bf16 %v468_v36  ;;  %v397_v32 = vld [vmem:[%s820_s2 + $0x5] sm:$0x1] }
  0xa0   :  { %v75_v41 = vadd.f32 %v74_v39, %v64_v38  ;;  %v469_v38 = vunpack.c.l.bf16 %v468_v36 }
  0xa1   :  { %607 = vmatpush3.msra.mxu1 %v474_v34 }
  0xa2   :  { %v86_v43 = vadd.f32 %v85_v40, %v75_v41  ;;  %608 = vmatprep.subr.mxu1 %v688_v7 }
  0xa3   :  { %609 = vmatpush3.msra.mxu1 %v473_v35 }
  0xa4   :  { %v98_v44 = vadd.f32 %v97_v42, %v86_v43  ;;  %610 = vmatprep.subr.mxu1 %v688_v7 }
  0xa5   :  { %611 = vmatpush3.msra.mxu1 %v470_v37 }
  0xa6   :  { %v99_v45 = vrot.slane %v98_v44, 4  ;;  %v106_v46 = vmul.f32 %v98_v44, %v98_v44  ;;  %612 = vmatprep.subr.mxu1 %v688_v7 }
  0xa7   :  { %613 = vmatpush3.msra.mxu1 %v469_v38 }
  0xa8   :  { %v100_v47 = vadd.f32 %v99_v45, %v98_v44  ;;  %v107_v48 = vrot.slane %v106_v46, 4 }
  0xaa   :  { %v101_v49 = vrot.slane %v100_v47, 2  ;;  %v108_v50 = vadd.f32 %v107_v48, %v106_v46 }
  0xac   :  { %v102_v51 = vadd.f32 %v101_v49, %v100_v47  ;;  %v109_v52 = vrot.slane %v108_v50, 2 }
  0xae   :  { %v103_v53 = vrot.slane %v102_v51, 1  ;;  %v110_v54 = vadd.f32 %v109_v52, %v108_v50 }
  0xb0   :  { %v111_v55 = vrot.slane %v110_v54, 1  ;;  %v104_v56 = vadd.f32 %v103_v53, %v102_v51 }
  0xb2   :  { %v112_v57 = vadd.f32 %v111_v55, %v110_v54  ;;  %v105_v58 = vmul.f32 0.125, %v104_v56 }
  0xb4   :  { %v113_v59 = vmul.f32 0.125, %v112_v57  ;;  %v114_v60 = vmul.f32 %v105_v58, %v105_v58 }
  0xb6   :  { %v115_v61 = vsub.f32 %v113_v59, %v114_v60  ;;  %v255_v59 = vld [vmem:[%s820_s2 + $0x2] sm:$0x1] }
  0xb8   :  { %v116_v62 = vmax.f32 %v115_v61, 0.0 }
  0xba   :  { %v118_v63 = vadd.f32 1e-05, %v116_v62  ;;  %v259_v62 = vld [vmem:[%s820_s2 + $0x3] sm:$0x1] }
  0xbc   :  { %631 = vrsqrt.f32 %v118_v63 }
  0xc9   :  { %v632_v4 = vpop.eup %631 }
  0xca   :  { %v120_v5 = vmul.f32 %v632_v4, %v117_v2 }
  0xcc   :  { %v122_v8 = vmul.f32 %v120_v5, %v105_v58  ;;  %v127_v9 = vrot.slane %v120_v5, %v771_v3 }
  0xce   :  { %v123_v10 = vsub.f32 %v121_v6, %v122_v8  ;;  %v128_v11 = vmul.f32 %v127_v9, %v98_v44 }
  0xd0   :  { %v132_v12 = vrot.slane %v123_v10, %v771_v3 }
  0xd2   :  { %v133_v13 = vadd.f32 %v132_v12, %v128_v11 }
  0xd4   :  { %v134_v14 = vmax.f32 %v133_v13, 0.0 }
  0xd6   :  { %580 = vmatmul.mubr.f32.vlgmr.msra.gmra.mxu0 %v134_v14 }
 0x196   :  { %v233_v39 = vpop.f32.mrf.mxu0 }
 0x197   :  { %v237_v40 = vrot.slane %v233_v39, 4  ;;  %v244_v41 = vmul.f32 %v233_v39, %v233_v39 }
 0x198   :  { %v581_v42 = vpop.f32.mrf.mxu0 }
 0x199   :  { %v238_v43 = vadd.f32 %v237_v40, %v233_v39  ;;  %v245_v44 = vrot.slane %v244_v41, 4  ;;  %v420_v42 = vstv %s823_s5 }
 0x19b   :  { %v239_v45 = vrot.slane %v238_v43, 2  ;;  %v246_v46 = vadd.f32 %v245_v44, %v244_v41 }
 0x19d   :  { %v240_v47 = vadd.f32 %v239_v45, %v238_v43  ;;  %v247_v48 = vrot.slane %v246_v46, 2 }
 0x19f   :  { %v241_v49 = vrot.slane %v240_v47, 1  ;;  %v248_v50 = vadd.f32 %v247_v48, %v246_v46 }
 0x1a1   :  { %v242_v51 = vadd.f32 %v241_v49, %v240_v47  ;;  %v249_v52 = vrot.slane %v248_v50, 1 }
 0x1a3   :  { %v243_v53 = vmul.f32 0.125, %v242_v51  ;;  %v250_v54 = vadd.f32 %v249_v52, %v248_v50 }
 0x1a5   :  { %v251_v55 = vmul.f32 0.125, %v250_v54  ;;  %v252_v56 = vmul.f32 %v243_v53, %v243_v53 }
 0x1a7   :  { %v253_v7 = vsub.f32 %v251_v55, %v252_v56 }
 0x1a9   :  { %v254_v57 = vmax.f32 %v253_v7, 0.0 }
 0x1ab   :  { %v256_v58 = vadd.f32 1e-05, %v254_v57 }
 0x1ad   :  { %633 = vrsqrt.f32 %v256_v58 }
 0x1ba   :  { %v634_v60 = vpop.eup %633 }
 0x1bb   :  { %v258_v61 = vmul.f32 %v634_v60, %v255_v59 }
 0x1bd   :  { %v265_v63 = vrot.slane %v258_v61, %v771_v3  ;;  %v260_v0 = vmul.f32 %v258_v61, %v243_v53 }
 0x1bf   :  { %v261_v1 = vsub.f32 %v259_v62, %v260_v0  ;;  %v266_v2 = vmul.f32 %v265_v63, %v233_v39  ;;  %v434_v39 = vld [vmem:[%s820_s2 + $0x6] ss:$0 sm:$0xff] }
 0x1c1   :  { %v270_v4 = vrot.slane %v261_v1, %v771_v3 }
 0x1c3   :  { %v271_v5 = vadd.f32 %v270_v4, %v266_v2 }
 0x1c5   :  { %v272_v6 = vmax.f32 %v271_v5, 0.0 }
 0x1c7   :  { %615 = vmatmul.mubr.f32.vlgmr.msra.gmra.mxu1 %v272_v6 }
 0x287   :  { %v371_v8 = vpop.f32.mrf.mxu1 }
 0x288   :  { %v375_v9 = vrot.slane %v371_v8, 4  ;;  %v382_v10 = vmul.f32 %v371_v8, %v371_v8 }
 0x289   :  { %v616_v11 = vpop.f32.mrf.mxu1 }
 0x28a   :  { %v376_v12 = vadd.f32 %v375_v9, %v371_v8  ;;  %v383_v13 = vrot.slane %v382_v10, 4 }
 0x28c   :  { %v377_v14 = vrot.slane %v376_v12, 2  ;;  %v384_v15 = vadd.f32 %v383_v13, %v382_v10 }
 0x28e   :  { %v378_v16 = vadd.f32 %v377_v14, %v376_v12  ;;  %v385_v17 = vrot.slane %v384_v15, 2 }
 0x290   :  { %v379_v18 = vrot.slane %v378_v16, 1  ;;  %v386_v19 = vadd.f32 %v385_v17, %v384_v15 }
 0x292   :  { %v380_v20 = vadd.f32 %v379_v18, %v378_v16  ;;  %v387_v21 = vrot.slane %v386_v19, 1 }
 0x294   :  { %v381_v22 = vmul.f32 0.125, %v380_v20  ;;  %v388_v23 = vadd.f32 %v387_v21, %v386_v19 }
 0x296   :  { %v389_v24 = vmul.f32 0.125, %v388_v23  ;;  %v390_v25 = vmul.f32 %v381_v22, %v381_v22 }
 0x298   :  { %v391_v26 = vsub.f32 %v389_v24, %v390_v25 }
 0x29a   :  { %v392_v27 = vmax.f32 %v391_v26, 0.0 }
 0x29c   :  { %v394_v28 = vadd.f32 1e-05, %v392_v27 }
 0x29e   :  { %635 = vrsqrt.f32 %v394_v28 }
 0x2ab   :  { %v636_v30 = vpop.eup %635 }
 0x2ac   :  { %v396_v31 = vmul.f32 %v636_v30, %v393_v29 }
 0x2ae   :  { %v403_v33 = vrot.slane %v396_v31, %v771_v3  ;;  %v398_v34 = vmul.f32 %v396_v31, %v381_v22 }
 0x2b0   :  { %v399_v35 = vsub.f32 %v397_v32, %v398_v34  ;;  %v404_v36 = vmul.f32 %v403_v33, %v371_v8 }
 0x2b2   :  { %v408_v37 = vrot.slane %v399_v35, %v771_v3 }
 0x2b4   :  { %v409_v38 = vadd.f32 %v408_v37, %v404_v36 }
 0x2b6   :  { %v410_v40 = vmax.f32 %v409_v38, 0.0 }
 0x2b8   :  { %v416_v41 = vmul.f32 %v434_v39, %v410_v40 }
 0x2ba   :  { %417 = vadd.xlane.f32.xlu1 %v416_v41 }
 0x343   :  { %v418_v43 = vpop.xlane.xlu1 %417 }
 0x344   :  { %v421_v44 = vadd.f32 %v420_v42, %v418_v43 }
 0x346   :  { %423 = vst.msk [vmem:[%s824_s6] sm:$0xff] %vm422_vm1, %v421_v44 }
 0x347   :  { %428 = vsyncpa [#allocation4], 1 }
 0x348   :  { %429 = vsyncpa [#allocation6], 1 }

</bundles_post_ra>
